<compile_context>
chip_gen: v7x
topology: tpu7x:2x2x1
jax: 0.10.0
libtpu: 0.0.40
codegen_flags: <defaults>
</compile_context>

<pallas_src>
import jax
import jax.numpy as jnp
from jax.experimental import pallas as pl
from jax.experimental.pallas import tpu as pltpu

NEG_INF = -1e18   # plain Python floats (jnp scalars would be captured consts)
TINY = 1e-30      # AllenNLP uses 1e-45; subnormals flush to 0 on the TPU VPU.


def _make_kernel(B, S, L, Bt):
    def kernel(span_ref, gt_ref,            # scalar prefetch (SMEM): [B,2] int32
               seq_hbm, w_ref, b_ref,       # seq [B,S,H] in HBM, W [2,H], b [2,1]
               logits_out, nll_out,         # (Bt,2,L) f32, (Bt,2,1) f32
               buf, sem):                   # VMEM (2,L,H), DMA sems (2,)
        g = pl.program_id(0)

        def issue(i, slot):
            b = jnp.minimum(g * Bt + i, B - 1)
            st = jnp.minimum(span_ref[b, 0], S - L)   # clamp: never OOB in HBM
            return pltpu.make_async_copy(
                seq_hbm.at[b, pl.ds(st, L), :], buf.at[slot], sem.at[slot])

        copies = [None] * Bt
        copies[0] = issue(0, 0)
        copies[0].start()

        pos = jax.lax.broadcasted_iota(jnp.int32, (2, L), 1)   # lane index
        row = jax.lax.broadcasted_iota(jnp.int32, (2, L), 0)   # 0=start, 1=end

        for i in range(Bt):                  # small static unrolled loop
            slot = i & 1
            if i + 1 < Bt:                   # prefetch next row's window
                copies[i + 1] = issue(i + 1, 1 - slot)
                copies[i + 1].start()
            copies[i].wait()

            b = jnp.minimum(g * Bt + i, B - 1)
            start = span_ref[b, 0]
            end = span_ref[b, 1]
            dma_start = jnp.minimum(start, S - L)
            delta = start - dma_start                  # > 0 only when clamped
            length = jnp.minimum(end - start + 1, L)

            # qa_outputs (Linear H->2) on the selected window, directly [2, L].
            ctx = buf[slot]                            # [L, H]
            logits = jnp.einsum('kh,lh->kl', w_ref[...], ctx,
                                preferred_element_type=jnp.float32)
            logits = logits + b_ref[...]               # [2, L]

            # replace_masked_values(..., -1e18)   (buffer coordinates)
            valid = (pos >= delta) & (pos < delta + length)
            masked = jnp.where(valid, logits, NEG_INF)
            logits_out[i] = masked

            # masked_log_softmax over the context (lane) axis
            v = masked + jnp.log(valid.astype(jnp.float32) + TINY)
            vmax = jnp.max(v, axis=1, keepdims=True)
            lse = vmax + jnp.log(jnp.sum(jnp.exp(v - vmax), axis=1,
                                         keepdims=True))
            logp = v - lse

            # per-example NLL at the gt indices (row 0 = start, row 1 = end)
            gt_s = jnp.minimum(gt_ref[b, 0] + delta, L - 1)
            gt_e = jnp.minimum(gt_ref[b, 1] + delta, L - 1)
            gt_idx = jnp.where(row == 0, gt_s, gt_e)   # [2, L]
            picked = jnp.where(pos == gt_idx, logp, 0.0)
            nll_out[i] = -jnp.sum(picked, axis=1, keepdims=True)   # [2, 1]
    return kernel


def bert_span_pallas(sequence_output, qa_weight, qa_bias, context_span,
                     gt_span, max_context_length, mode="train", block_b=2):
    """sequence_output: [B,S,H]; qa_weight: [2,H] (PyTorch nn.Linear layout);
    spans: [B,2] inclusive [start, end]; gt_span is context-relative."""
    B, S, H = sequence_output.shape
    L = int(max_context_length)
    assert S >= L, "max_context_length must not exceed the sequence length"

    Bt = max(1, min(int(block_b), B))
    num_blocks = -(-B // Bt)
    Bpad = num_blocks * Bt

    span = context_span.astype(jnp.int32)
    gt = (gt_span if gt_span is not None else jnp.zeros_like(span)).astype(jnp.int32)
    w = qa_weight.astype(sequence_output.dtype)        # bf16-friendly weights
    b2 = qa_bias.reshape(2, 1).astype(jnp.float32)

    grid_spec = pltpu.PrefetchScalarGridSpec(
        num_scalar_prefetch=2,
        grid=(num_blocks,),
        in_specs=[
            pl.BlockSpec(memory_space=pl.ANY),                       # seq (HBM)
            pl.BlockSpec((2, H), lambda g, span, gt: (0, 0)),        # W
            pl.BlockSpec((2, 1), lambda g, span, gt: (0, 0)),        # bias
        ],
        out_specs=[
            pl.BlockSpec((Bt, 2, L), lambda g, span, gt: (g, 0, 0)),
            pl.BlockSpec((Bt, 2, 1), lambda g, span, gt: (g, 0, 0)),
        ],
        scratch_shapes=[
            pltpu.VMEM((2, L, H), sequence_output.dtype),
            pltpu.SemaphoreType.DMA((2,)),
        ],
    )

    logits_buf, nll = pl.pallas_call(
        _make_kernel(B, S, L, Bt),
        out_shape=(
            jax.ShapeDtypeStruct((Bpad, 2, L), jnp.float32),
            jax.ShapeDtypeStruct((Bpad, 2, 1), jnp.float32),
        ),
        grid_spec=grid_spec,
        compiler_params=pltpu.CompilerParams(
            dimension_semantics=("parallel",)),
    )(span, gt, sequence_output, w, b2)

    logits_buf = logits_buf[:B]
    nll = nll[:B]

    context_length = jnp.minimum(
        context_span[:, 1] - context_span[:, 0] + 1, L).astype(jnp.int32)

    if mode == "train":
        # nll_loss(reduction='mean') over the batch, start head + end head
        return jnp.mean(nll[:, 0, 0]) + jnp.mean(nll[:, 1, 0])

    # eval: realign the (rare) clamped windows back to context coordinates
    delta = context_span[:, 0].astype(jnp.int32) - jnp.minimum(
        context_span[:, 0].astype(jnp.int32), S - L)                   # [B]
    q = jnp.arange(L, dtype=jnp.int32)
    idx = jnp.clip(q[None, :] + delta[:, None], 0, L - 1)              # [B, L]
    gathered = jnp.take_along_axis(logits_buf, idx[:, None, :], axis=2)
    mask = q[None, :] < context_length[:, None]
    start_logits = jnp.where(mask, gathered[:, 0, :], NEG_INF)
    end_logits = jnp.where(mask, gathered[:, 1, :], NEG_INF)
    return start_logits, end_logits, context_length


def _reference_forward(sequence_output, qa_weight, qa_bias, context_span,
                       gt_span, L):
    """Pure-JAX replica of the PyTorch module."""
    B, S, H = sequence_output.shape
    logits = jnp.einsum('bsh,kh->bsk', sequence_output.astype(jnp.float32),
                        qa_weight.astype(jnp.float32)) + qa_bias       # [B,S,2]
    idx = jnp.clip(context_span[:, 0:1] + jnp.arange(L)[None, :], 0, S - 1)
    ctx = jnp.take_along_axis(logits, idx[:, :, None], axis=1)         # [B,L,2]
    length = jnp.minimum(context_span[:, 1] - context_span[:, 0] + 1, L)
    mask = jnp.arange(L)[None, :] < length[:, None]
    s = jnp.where(mask, ctx[:, :, 0], NEG_INF)
    e = jnp.where(mask, ctx[:, :, 1], NEG_INF)

    def mls(v, m):
        v = v + jnp.log(m.astype(jnp.float32) + TINY)
        return v - jax.scipy.special.logsumexp(v, axis=-1, keepdims=True)

    slp, elp = mls(s, mask), mls(e, mask)
    sl = -jnp.take_along_axis(slp, gt_span[:, 0:1], axis=1)[:, 0]
    el = -jnp.take_along_axis(elp, gt_span[:, 1:2], axis=1)[:, 0]
    return jnp.mean(sl) + jnp.mean(el), s, e, length.astype(jnp.int32)


if __name__ == "__main__":
    key = jax.random.PRNGKey(0)
    B, S, H, V = 3, 160, 128, 64
    L = 128
    k_emb, k_type, k_w, k_ids = jax.random.split(key, 4)

    # TODO(synk): bert_encoder is an injected full transformer; stand in with a
    # deterministic embedding lookup producing sequence_output [B, S, H].
    word_emb = 0.02 * jax.random.normal(k_emb, (V, H), jnp.float32)
    type_emb = 0.02 * jax.random.normal(k_type, (2, H), jnp.float32)
    input_ids = jax.random.randint(k_ids, (B, S), 0, V)
    token_type_ids = jnp.zeros((B, S), jnp.int32)
    attention_mask = jnp.ones((B, S), jnp.int32)   # unused by the stand-in
    sequence_output = word_emb[input_ids] + type_emb[token_type_ids]

    # qa_outputs = nn.Linear(H, 2) with init_bert_weights: W~N(0,0.02), b=0
    qa_weight = 0.02 * jax.random.normal(k_w, (2, H), jnp.float32)   # [2, H]
    qa_bias = jnp.zeros((2,), jnp.float32)

    context_span = jnp.array([[2, 100], [17, 144], [5, 132]], jnp.int32)
    gt_span = jnp.array([[10, 50], [0, 120], [3, 90]], jnp.int32)

    loss = bert_span_pallas(sequence_output, qa_weight, qa_bias,
                            context_span, gt_span, L, mode="train")
    loss = jax.block_until_ready(loss)

    s_logits, e_logits, ctx_len = bert_span_pallas(
        sequence_output, qa_weight, qa_bias, context_span, gt_span, L,
        mode="eval")
    jax.block_until_ready((s_logits, e_logits, ctx_len))

    ref_loss, ref_s, ref_e, ref_len = _reference_forward(
        sequence_output, qa_weight, qa_bias, context_span, gt_span, L)

    assert jnp.allclose(loss, ref_loss, rtol=2e-3, atol=2e-3), (loss, ref_loss)
    assert jnp.allclose(s_logits, ref_s, rtol=2e-3, atol=2e-3)
    assert jnp.allclose(e_logits, ref_e, rtol=2e-3, atol=2e-3)
    assert jnp.array_equal(ctx_len, ref_len)
    print("KERNEL_OK")
</pallas_src>

<mosaic_0001>
module attributes {stable_mosaic.version = 11 : i64} {
  func.func @kernel(%arg0: i32, %arg1: memref<3x2xi32, #tpu.memory_space<smem>>, %arg2: memref<3x2xi32, #tpu.memory_space<smem>>, %arg3: memref<3x160x128xf32, #tpu.memory_space<any>>, %arg4: memref<2x128xf32, #tpu.memory_space<vmem>>, %arg5: memref<2x1xf32, #tpu.memory_space<vmem>>, %arg6: memref<2x2x128xf32, #tpu.memory_space<vmem>>, %arg7: memref<2x2x1xf32, #tpu.memory_space<vmem>>, %arg8: memref<2x128x128xf32, #tpu.memory_space<vmem>>, %arg9: memref<2x!tpu.dma_semaphore, #tpu.memory_space<semaphore_mem>>) attributes {dimension_semantics = [#tpu.dimension_semantics<parallel>], iteration_bounds = array<i64: 2>, scalar_prefetch = 2 : i64, scratch_operands = 2 : i64, tpu.core_type = #tpu.core_type<tc>, window_params = [{}, {pipeline_mode = #tpu.pipeline_mode<synchronous>, transform_indices = @transform_1, window_bounds = array<i64: 2, 128>}, {pipeline_mode = #tpu.pipeline_mode<synchronous>, transform_indices = @transform_2, window_bounds = array<i64: 2, 1>}, {transform_indices = @transform_3, window_bounds = array<i64: 2, 2, 128>}, {transform_indices = @transform_4, window_bounds = array<i64: 2, 2, 1>}]} {
    %c2_i32 = arith.constant 2 : i32
    %0 = arith.muli %arg0, %c2_i32 : i32
    %c0_i32 = arith.constant 0 : i32
    %1 = arith.addi %0, %c0_i32 : i32
    %c2_i32_0 = arith.constant 2 : i32
    %2 = arith.minsi %1, %c2_i32_0 : i32
    %3 = arith.index_cast %2 : i32 to index
    %c0 = arith.constant 0 : index
    %4 = memref.load %arg1[%3, %c0] : memref<3x2xi32, #tpu.memory_space<smem>>
    %c32_i32 = arith.constant 32 : i32
    %5 = arith.minsi %4, %c32_i32 : i32
    %c0_i32_1 = arith.constant 0 : i32
    %c0_i32_2 = arith.constant 0 : i32
    %c0_i32_3 = arith.constant 0 : i32
    %6 = tpu.memref_slice %arg3[%2, %5, %c0_i32_3] : memref<3x160x128xf32, #tpu.memory_space<any>> -> memref<1x128x128xf32, #tpu.memory_space<any>>
    %7 = tpu.memref_squeeze %6 : memref<1x128x128xf32, #tpu.memory_space<any>> -> memref<128x128xf32, #tpu.memory_space<any>>
    %c0_i32_4 = arith.constant 0 : i32
    %c0_i32_5 = arith.constant 0 : i32
    %8 = tpu.memref_slice %arg8[%c0_i32_1, %c0_i32_4, %c0_i32_5] : memref<2x128x128xf32, #tpu.memory_space<vmem>> -> memref<1x128x128xf32, #tpu.memory_space<vmem>>
    %9 = tpu.memref_squeeze %8 : memref<1x128x128xf32, #tpu.memory_space<vmem>> -> memref<128x128xf32, #tpu.memory_space<vmem>>
    %10 = tpu.memref_slice %arg9[%c0_i32_2] : memref<2x!tpu.dma_semaphore, #tpu.memory_space<semaphore_mem>> -> memref<1x!tpu.dma_semaphore, #tpu.memory_space<semaphore_mem>>
    %11 = tpu.memref_squeeze %10 : memref<1x!tpu.dma_semaphore, #tpu.memory_space<semaphore_mem>> -> memref<!tpu.dma_semaphore, #tpu.memory_space<semaphore_mem>>
    tpu.enqueue_dma source(%7 : memref<128x128xf32, #tpu.memory_space<any>>) target(%9 : memref<128x128xf32, #tpu.memory_space<vmem>>) target_semaphore(%11 : memref<!tpu.dma_semaphore, #tpu.memory_space<semaphore_mem>>)
    %12 = tpu.iota {dimensions = array<i32: 1>} : vector<2x128xi32>
    %13 = tpu.iota {dimensions = array<i32: 0>} : vector<2x128xi32>
    %c2_i32_6 = arith.constant 2 : i32
    %14 = arith.muli %arg0, %c2_i32_6 : i32
    %c1_i32 = arith.constant 1 : i32
    %15 = arith.addi %14, %c1_i32 : i32
    %c2_i32_7 = arith.constant 2 : i32
    %16 = arith.minsi %15, %c2_i32_7 : i32
    %17 = arith.index_cast %16 : i32 to index
    %c0_8 = arith.constant 0 : index
    %18 = memref.load %arg1[%17, %c0_8] : memref<3x2xi32, #tpu.memory_space<smem>>
    %c32_i32_9 = arith.constant 32 : i32
    %19 = arith.minsi %18, %c32_i32_9 : i32
    %c1_i32_10 = arith.constant 1 : i32
    %c1_i32_11 = arith.constant 1 : i32
    %c0_i32_12 = arith.constant 0 : i32
    %20 = tpu.memref_slice %arg3[%16, %19, %c0_i32_12] : memref<3x160x128xf32, #tpu.memory_space<any>> -> memref<1x128x128xf32, #tpu.memory_space<any>>
    %21 = tpu.memref_squeeze %20 : memref<1x128x128xf32, #tpu.memory_space<any>> -> memref<128x128xf32, #tpu.memory_space<any>>
    %c0_i32_13 = arith.constant 0 : i32
    %c0_i32_14 = arith.constant 0 : i32
    %22 = tpu.memref_slice %arg8[%c1_i32_10, %c0_i32_13, %c0_i32_14] : memref<2x128x128xf32, #tpu.memory_space<vmem>> -> memref<1x128x128xf32, #tpu.memory_space<vmem>>
    %23 = tpu.memref_squeeze %22 : memref<1x128x128xf32, #tpu.memory_space<vmem>> -> memref<128x128xf32, #tpu.memory_space<vmem>>
    %24 = tpu.memref_slice %arg9[%c1_i32_11] : memref<2x!tpu.dma_semaphore, #tpu.memory_space<semaphore_mem>> -> memref<1x!tpu.dma_semaphore, #tpu.memory_space<semaphore_mem>>
    %25 = tpu.memref_squeeze %24 : memref<1x!tpu.dma_semaphore, #tpu.memory_space<semaphore_mem>> -> memref<!tpu.dma_semaphore, #tpu.memory_space<semaphore_mem>>
    tpu.enqueue_dma source(%21 : memref<128x128xf32, #tpu.memory_space<any>>) target(%23 : memref<128x128xf32, #tpu.memory_space<vmem>>) target_semaphore(%25 : memref<!tpu.dma_semaphore, #tpu.memory_space<semaphore_mem>>)
    %c0_i32_15 = arith.constant 0 : i32
    %c0_i32_16 = arith.constant 0 : i32
    %c0_i32_17 = arith.constant 0 : i32
    %26 = tpu.memref_slice %arg3[%2, %5, %c0_i32_17] : memref<3x160x128xf32, #tpu.memory_space<any>> -> memref<1x128x128xf32, #tpu.memory_space<any>>
    %27 = tpu.memref_squeeze %26 : memref<1x128x128xf32, #tpu.memory_space<any>> -> memref<128x128xf32, #tpu.memory_space<any>>
    %c0_i32_18 = arith.constant 0 : i32
    %c0_i32_19 = arith.constant 0 : i32
    %28 = tpu.memref_slice %arg8[%c0_i32_15, %c0_i32_18, %c0_i32_19] : memref<2x128x128xf32, #tpu.memory_space<vmem>> -> memref<1x128x128xf32, #tpu.memory_space<vmem>>
    %29 = tpu.memref_squeeze %28 : memref<1x128x128xf32, #tpu.memory_space<vmem>> -> memref<128x128xf32, #tpu.memory_space<vmem>>
    %30 = tpu.memref_slice %arg9[%c0_i32_16] : memref<2x!tpu.dma_semaphore, #tpu.memory_space<semaphore_mem>> -> memref<1x!tpu.dma_semaphore, #tpu.memory_space<semaphore_mem>>
    %31 = tpu.memref_squeeze %30 : memref<1x!tpu.dma_semaphore, #tpu.memory_space<semaphore_mem>> -> memref<!tpu.dma_semaphore, #tpu.memory_space<semaphore_mem>>
    tpu.wait_dma2 semaphore(%31 : memref<!tpu.dma_semaphore, #tpu.memory_space<semaphore_mem>>) src(%27 : memref<128x128xf32, #tpu.memory_space<any>>) dst(%29 : memref<128x128xf32, #tpu.memory_space<vmem>>)
    %c2_i32_20 = arith.constant 2 : i32
    %32 = arith.muli %arg0, %c2_i32_20 : i32
    %c0_i32_21 = arith.constant 0 : i32
    %33 = arith.addi %32, %c0_i32_21 : i32
    %c2_i32_22 = arith.constant 2 : i32
    %34 = arith.minsi %33, %c2_i32_22 : i32
    %35 = arith.index_cast %34 : i32 to index
    %c0_23 = arith.constant 0 : index
    %36 = memref.load %arg1[%35, %c0_23] : memref<3x2xi32, #tpu.memory_space<smem>>
    %37 = arith.index_cast %34 : i32 to index
    %c1 = arith.constant 1 : index
    %38 = memref.load %arg1[%37, %c1] : memref<3x2xi32, #tpu.memory_space<smem>>
    %c32_i32_24 = arith.constant 32 : i32
    %39 = arith.minsi %36, %c32_i32_24 : i32
    %40 = arith.subi %36, %39 : i32
    %41 = arith.subi %38, %36 : i32
    %c1_i32_25 = arith.constant 1 : i32
    %42 = arith.addi %41, %c1_i32_25 : i32
    %c128_i32 = arith.constant 128 : i32
    %43 = arith.minsi %42, %c128_i32 : i32
    %c0_26 = arith.constant 0 : index
    %c0_27 = arith.constant 0 : index
    %c0_28 = arith.constant 0 : index
    %44 = vector.load %arg8[%c0_26, %c0_27, %c0_28] : memref<2x128x128xf32, #tpu.memory_space<vmem>>, vector<1x128x128xf32>
    %45 = vector.shape_cast %44 : vector<1x128x128xf32> to vector<128x128xf32>
    %c0_29 = arith.constant 0 : index
    %c0_30 = arith.constant 0 : index
    %46 = vector.load %arg4[%c0_29, %c0_30] : memref<2x128xf32, #tpu.memory_space<vmem>>, vector<2x128xf32>
    "tpu.trace_start"() <{level = 10 : i32, message = "kh,lh->kl"}> : () -> ()
    %cst = arith.constant dense<0.000000e+00> : vector<2x128xf32>
    %47 = tpu.matmul %46, %45, %cst {dimension_numbers = #tpu.dot_dimension_numbers<[1], [1], [0], [0], [0, 0, 1, 0], [], []>} : vector<2x128xf32>, vector<128x128xf32>, vector<2x128xf32> -> vector<2x128xf32>
    "tpu.trace_stop"() : () -> ()
    %c0_31 = arith.constant 0 : index
    %c0_32 = arith.constant 0 : index
    %48 = vector.load %arg5[%c0_31, %c0_32] : memref<2x1xf32, #tpu.memory_space<vmem>>, vector<2x1xf32>
    %49 = vector.broadcast %48 : vector<2x1xf32> to vector<2x128xf32>
    %50 = arith.addf %47, %49 : vector<2x128xf32>
    %51 = vector.broadcast %40 : i32 to vector<2x128xi32>
    %52 = arith.cmpi sge, %12, %51 : vector<2x128xi32>
    %53 = arith.addi %40, %43 : i32
    %54 = vector.broadcast %53 : i32 to vector<2x128xi32>
    %55 = arith.cmpi slt, %12, %54 : vector<2x128xi32>
    %56 = arith.andi %52, %55 : vector<2x128xi1>
    %cst_33 = arith.constant -9.99999984E+17 : f32
    %57 = vector.broadcast %cst_33 : f32 to vector<2x128xf32>
    %58 = arith.select %56, %50, %57 : vector<2x128xi1>, vector<2x128xf32>
    %c0_34 = arith.constant 0 : index
    %c0_35 = arith.constant 0 : index
    %c0_36 = arith.constant 0 : index
    %59 = vector.load %arg6[%c0_34, %c0_35, %c0_36] : memref<2x2x128xf32, #tpu.memory_space<vmem>>, vector<1x2x128xf32>
    %60 = vector.shape_cast %59 : vector<1x2x128xf32> to vector<2x128xf32>
    %61 = vector.shape_cast %58 : vector<2x128xf32> to vector<1x2x128xf32>
    tpu.vector_store %arg6[%c0_34, %c0_35, %c0_36], %61 {strides = array<i32>} : memref<2x2x128xf32, #tpu.memory_space<vmem>>, vector<1x2x128xf32>,
    %62 = arith.extui %56 : vector<2x128xi1> to vector<2x128xi32>
    %63 = arith.sitofp %62 : vector<2x128xi32> to vector<2x128xf32>
    %cst_37 = arith.constant 1.000000e-30 : f32
    %64 = vector.broadcast %cst_37 : f32 to vector<2x128xf32>
    %65 = arith.addf %63, %64 : vector<2x128xf32>
    %66 = math.log %65 : vector<2x128xf32>
    %67 = arith.addf %58, %66 : vector<2x128xf32>
    %cst_38 = arith.constant dense<0xFF800000> : vector<2xf32>
    %68 = vector.multi_reduction <maximumf>, %67, %cst_38 [1] : vector<2x128xf32> to vector<2xf32>
    %69 = vector.shape_cast %68 : vector<2xf32> to vector<2x1xf32>
    %70 = vector.broadcast %69 : vector<2x1xf32> to vector<2x128xf32>
    %71 = arith.subf %67, %70 : vector<2x128xf32>
    %72 = math.exp %71 : vector<2x128xf32>
    %cst_39 = arith.constant dense<0.000000e+00> : vector<2xf32>
    %73 = vector.multi_reduction <add>, %72, %cst_39 [1] : vector<2x128xf32> to vector<2xf32>
    %74 = vector.shape_cast %73 : vector<2xf32> to vector<2x1xf32>
    %75 = math.log %74 : vector<2x1xf32>
    %76 = arith.addf %69, %75 : vector<2x1xf32>
    %77 = vector.broadcast %76 : vector<2x1xf32> to vector<2x128xf32>
    %78 = arith.subf %67, %77 : vector<2x128xf32>
    %79 = arith.index_cast %34 : i32 to index
    %c0_40 = arith.constant 0 : index
    %80 = memref.load %arg2[%79, %c0_40] : memref<3x2xi32, #tpu.memory_space<smem>>
    %81 = arith.addi %80, %40 : i32
    %c127_i32 = arith.constant 127 : i32
    %82 = arith.minsi %81, %c127_i32 : i32
    %83 = arith.index_cast %34 : i32 to index
    %c1_41 = arith.constant 1 : index
    %84 = memref.load %arg2[%83, %c1_41] : memref<3x2xi32, #tpu.memory_space<smem>>
    %85 = arith.addi %84, %40 : i32
    %c127_i32_42 = arith.constant 127 : i32
    %86 = arith.minsi %85, %c127_i32_42 : i32
    %c0_i32_43 = arith.constant 0 : i32
    %87 = vector.broadcast %c0_i32_43 : i32 to vector<2x128xi32>
    %88 = arith.cmpi eq, %13, %87 : vector<2x128xi32>
    %89 = vector.broadcast %82 : i32 to vector<2x128xi32>
    %90 = vector.broadcast %86 : i32 to vector<2x128xi32>
    %91 = arith.select %88, %89, %90 : vector<2x128xi1>, vector<2x128xi32>
    %92 = arith.cmpi eq, %12, %91 : vector<2x128xi32>
    %cst_44 = arith.constant 0.000000e+00 : f32
    %93 = vector.broadcast %cst_44 : f32 to vector<2x128xf32>
    %94 = arith.select %92, %78, %93 : vector<2x128xi1>, vector<2x128xf32>
    %cst_45 = arith.constant dense<0.000000e+00> : vector<2xf32>
    %95 = vector.multi_reduction <add>, %94, %cst_45 [1] : vector<2x128xf32> to vector<2xf32>
    %96 = vector.shape_cast %95 : vector<2xf32> to vector<2x1xf32>
    %cst_46 = arith.constant 0.000000e+00 : f32
    %97 = vector.broadcast %cst_46 : f32 to vector<2x1xf32>
    %98 = arith.subf %97, %96 : vector<2x1xf32>
    %c0_47 = arith.constant 0 : index
    %c0_48 = arith.constant 0 : index
    %c0_49 = arith.constant 0 : index
    %99 = vector.load %arg7[%c0_47, %c0_48, %c0_49] : memref<2x2x1xf32, #tpu.memory_space<vmem>>, vector<1x2x1xf32>
    %100 = vector.shape_cast %99 : vector<1x2x1xf32> to vector<2x1xf32>
    %101 = vector.shape_cast %98 : vector<2x1xf32> to vector<1x2x1xf32>
    tpu.vector_store %arg7[%c0_47, %c0_48, %c0_49], %101 {strides = array<i32>} : memref<2x2x1xf32, #tpu.memory_space<vmem>>, vector<1x2x1xf32>,
    %c1_i32_50 = arith.constant 1 : i32
    %c1_i32_51 = arith.constant 1 : i32
    %c0_i32_52 = arith.constant 0 : i32
    %102 = tpu.memref_slice %arg3[%16, %19, %c0_i32_52] : memref<3x160x128xf32, #tpu.memory_space<any>> -> memref<1x128x128xf32, #tpu.memory_space<any>>
    %103 = tpu.memref_squeeze %102 : memref<1x128x128xf32, #tpu.memory_space<any>> -> memref<128x128xf32, #tpu.memory_space<any>>
    %c0_i32_53 = arith.constant 0 : i32
    %c0_i32_54 = arith.constant 0 : i32
    %104 = tpu.memref_slice %arg8[%c1_i32_50, %c0_i32_53, %c0_i32_54] : memref<2x128x128xf32, #tpu.memory_space<vmem>> -> memref<1x128x128xf32, #tpu.memory_space<vmem>>
    %105 = tpu.memref_squeeze %104 : memref<1x128x128xf32, #tpu.memory_space<vmem>> -> memref<128x128xf32, #tpu.memory_space<vmem>>
    %106 = tpu.memref_slice %arg9[%c1_i32_51] : memref<2x!tpu.dma_semaphore, #tpu.memory_space<semaphore_mem>> -> memref<1x!tpu.dma_semaphore, #tpu.memory_space<semaphore_mem>>
    %107 = tpu.memref_squeeze %106 : memref<1x!tpu.dma_semaphore, #tpu.memory_space<semaphore_mem>> -> memref<!tpu.dma_semaphore, #tpu.memory_space<semaphore_mem>>
    tpu.wait_dma2 semaphore(%107 : memref<!tpu.dma_semaphore, #tpu.memory_space<semaphore_mem>>) src(%103 : memref<128x128xf32, #tpu.memory_space<any>>) dst(%105 : memref<128x128xf32, #tpu.memory_space<vmem>>)
    %c2_i32_55 = arith.constant 2 : i32
    %108 = arith.muli %arg0, %c2_i32_55 : i32
    %c1_i32_56 = arith.constant 1 : i32
    %109 = arith.addi %108, %c1_i32_56 : i32
    %c2_i32_57 = arith.constant 2 : i32
    %110 = arith.minsi %109, %c2_i32_57 : i32
    %111 = arith.index_cast %110 : i32 to index
    %c0_58 = arith.constant 0 : index
    %112 = memref.load %arg1[%111, %c0_58] : memref<3x2xi32, #tpu.memory_space<smem>>
    %113 = arith.index_cast %110 : i32 to index
    %c1_59 = arith.constant 1 : index
    %114 = memref.load %arg1[%113, %c1_59] : memref<3x2xi32, #tpu.memory_space<smem>>
    %c32_i32_60 = arith.constant 32 : i32
    %115 = arith.minsi %112, %c32_i32_60 : i32
    %116 = arith.subi %112, %115 : i32
    %117 = arith.subi %114, %112 : i32
    %c1_i32_61 = arith.constant 1 : i32
    %118 = arith.addi %117, %c1_i32_61 : i32
    %c128_i32_62 = arith.constant 128 : i32
    %119 = arith.minsi %118, %c128_i32_62 : i32
    %c1_63 = arith.constant 1 : index
    %c0_64 = arith.constant 0 : index
    %c0_65 = arith.constant 0 : index
    %120 = vector.load %arg8[%c1_63, %c0_64, %c0_65] : memref<2x128x128xf32, #tpu.memory_space<vmem>>, vector<1x128x128xf32>
    %121 = vector.shape_cast %120 : vector<1x128x128xf32> to vector<128x128xf32>
    %c0_66 = arith.constant 0 : index
    %c0_67 = arith.constant 0 : index
    %122 = vector.load %arg4[%c0_66, %c0_67] : memref<2x128xf32, #tpu.memory_space<vmem>>, vector<2x128xf32>
    "tpu.trace_start"() <{level = 10 : i32, message = "kh,lh->kl"}> : () -> ()
    %cst_68 = arith.constant dense<0.000000e+00> : vector<2x128xf32>
    %123 = tpu.matmul %122, %121, %cst_68 {dimension_numbers = #tpu.dot_dimension_numbers<[1], [1], [0], [0], [0, 0, 1, 0], [], []>} : vector<2x128xf32>, vector<128x128xf32>, vector<2x128xf32> -> vector<2x128xf32>
    "tpu.trace_stop"() : () -> ()
    %c0_69 = arith.constant 0 : index
    %c0_70 = arith.constant 0 : index
    %124 = vector.load %arg5[%c0_69, %c0_70] : memref<2x1xf32, #tpu.memory_space<vmem>>, vector<2x1xf32>
    %125 = vector.broadcast %124 : vector<2x1xf32> to vector<2x128xf32>
    %126 = arith.addf %123, %125 : vector<2x128xf32>
    %127 = vector.broadcast %116 : i32 to vector<2x128xi32>
    %128 = arith.cmpi sge, %12, %127 : vector<2x128xi32>
    %129 = arith.addi %116, %119 : i32
    %130 = vector.broadcast %129 : i32 to vector<2x128xi32>
    %131 = arith.cmpi slt, %12, %130 : vector<2x128xi32>
    %132 = arith.andi %128, %131 : vector<2x128xi1>
    %cst_71 = arith.constant -9.99999984E+17 : f32
    %133 = vector.broadcast %cst_71 : f32 to vector<2x128xf32>
    %134 = arith.select %132, %126, %133 : vector<2x128xi1>, vector<2x128xf32>
    %c1_72 = arith.constant 1 : index
    %c0_73 = arith.constant 0 : index
    %c0_74 = arith.constant 0 : index
    %135 = vector.load %arg6[%c1_72, %c0_73, %c0_74] : memref<2x2x128xf32, #tpu.memory_space<vmem>>, vector<1x2x128xf32>
    %136 = vector.shape_cast %135 : vector<1x2x128xf32> to vector<2x128xf32>
    %137 = vector.shape_cast %134 : vector<2x128xf32> to vector<1x2x128xf32>
    tpu.vector_store %arg6[%c1_72, %c0_73, %c0_74], %137 {strides = array<i32>} : memref<2x2x128xf32, #tpu.memory_space<vmem>>, vector<1x2x128xf32>,
    %138 = arith.extui %132 : vector<2x128xi1> to vector<2x128xi32>
    %139 = arith.sitofp %138 : vector<2x128xi32> to vector<2x128xf32>
    %cst_75 = arith.constant 1.000000e-30 : f32
    %140 = vector.broadcast %cst_75 : f32 to vector<2x128xf32>
    %141 = arith.addf %139, %140 : vector<2x128xf32>
    %142 = math.log %141 : vector<2x128xf32>
    %143 = arith.addf %134, %142 : vector<2x128xf32>
    %cst_76 = arith.constant dense<0xFF800000> : vector<2xf32>
    %144 = vector.multi_reduction <maximumf>, %143, %cst_76 [1] : vector<2x128xf32> to vector<2xf32>
    %145 = vector.shape_cast %144 : vector<2xf32> to vector<2x1xf32>
    %146 = vector.broadcast %145 : vector<2x1xf32> to vector<2x128xf32>
    %147 = arith.subf %143, %146 : vector<2x128xf32>
    %148 = math.exp %147 : vector<2x128xf32>
    %cst_77 = arith.constant dense<0.000000e+00> : vector<2xf32>
    %149 = vector.multi_reduction <add>, %148, %cst_77 [1] : vector<2x128xf32> to vector<2xf32>
    %150 = vector.shape_cast %149 : vector<2xf32> to vector<2x1xf32>
    %151 = math.log %150 : vector<2x1xf32>
    %152 = arith.addf %145, %151 : vector<2x1xf32>
    %153 = vector.broadcast %152 : vector<2x1xf32> to vector<2x128xf32>
    %154 = arith.subf %143, %153 : vector<2x128xf32>
    %155 = arith.index_cast %110 : i32 to index
    %c0_78 = arith.constant 0 : index
    %156 = memref.load %arg2[%155, %c0_78] : memref<3x2xi32, #tpu.memory_space<smem>>
    %157 = arith.addi %156, %116 : i32
    %c127_i32_79 = arith.constant 127 : i32
    %158 = arith.minsi %157, %c127_i32_79 : i32
    %159 = arith.index_cast %110 : i32 to index
    %c1_80 = arith.constant 1 : index
    %160 = memref.load %arg2[%159, %c1_80] : memref<3x2xi32, #tpu.memory_space<smem>>
    %161 = arith.addi %160, %116 : i32
    %c127_i32_81 = arith.constant 127 : i32
    %162 = arith.minsi %161, %c127_i32_81 : i32
    %c0_i32_82 = arith.constant 0 : i32
    %163 = vector.broadcast %c0_i32_82 : i32 to vector<2x128xi32>
    %164 = arith.cmpi eq, %13, %163 : vector<2x128xi32>
    %165 = vector.broadcast %158 : i32 to vector<2x128xi32>
    %166 = vector.broadcast %162 : i32 to vector<2x128xi32>
    %167 = arith.select %164, %165, %166 : vector<2x128xi1>, vector<2x128xi32>
    %168 = arith.cmpi eq, %12, %167 : vector<2x128xi32>
    %cst_83 = arith.constant 0.000000e+00 : f32
    %169 = vector.broadcast %cst_83 : f32 to vector<2x128xf32>
    %170 = arith.select %168, %154, %169 : vector<2x128xi1>, vector<2x128xf32>
    %cst_84 = arith.constant dense<0.000000e+00> : vector<2xf32>
    %171 = vector.multi_reduction <add>, %170, %cst_84 [1] : vector<2x128xf32> to vector<2xf32>
    %172 = vector.shape_cast %171 : vector<2xf32> to vector<2x1xf32>
    %cst_85 = arith.constant 0.000000e+00 : f32
    %173 = vector.broadcast %cst_85 : f32 to vector<2x1xf32>
    %174 = arith.subf %173, %172 : vector<2x1xf32>
    %c1_86 = arith.constant 1 : index
    %c0_87 = arith.constant 0 : index
    %c0_88 = arith.constant 0 : index
    %175 = vector.load %arg7[%c1_86, %c0_87, %c0_88] : memref<2x2x1xf32, #tpu.memory_space<vmem>>, vector<1x2x1xf32>
    %176 = vector.shape_cast %175 : vector<1x2x1xf32> to vector<2x1xf32>
    %177 = vector.shape_cast %174 : vector<2x1xf32> to vector<1x2x1xf32>
    tpu.vector_store %arg7[%c1_86, %c0_87, %c0_88], %177 {strides = array<i32>} : memref<2x2x1xf32, #tpu.memory_space<vmem>>, vector<1x2x1xf32>,
    return
  }
  func.func @transform_1(%arg0: i32, %arg1: memref<3x2xi32, #tpu.memory_space<smem>>, %arg2: memref<3x2xi32, #tpu.memory_space<smem>>) -> (i32, i32) {
    %c0_i32 = arith.constant 0 : i32
    %c0_i32_0 = arith.constant 0 : i32
    %c0_i32_1 = arith.constant 0 : i32
    return %c0_i32, %c0_i32_0 : i32, i32
  }
  func.func @transform_2(%arg0: i32, %arg1: memref<3x2xi32, #tpu.memory_space<smem>>, %arg2: memref<3x2xi32, #tpu.memory_space<smem>>) -> (i32, i32) {
    %c0_i32 = arith.constant 0 : i32
    %c0_i32_0 = arith.constant 0 : i32
    %c0_i32_1 = arith.constant 0 : i32
    return %c0_i32, %c0_i32_0 : i32, i32
  }
  func.func @transform_3(%arg0: i32, %arg1: memref<3x2xi32, #tpu.memory_space<smem>>, %arg2: memref<3x2xi32, #tpu.memory_space<smem>>) -> (i32, i32, i32) {
    %c0_i32 = arith.constant 0 : i32
    %c0_i32_0 = arith.constant 0 : i32
    %c0_i32_1 = arith.constant 0 : i32
    return %arg0, %c0_i32, %c0_i32_0 : i32, i32, i32
  }
  func.func @transform_4(%arg0: i32, %arg1: memref<3x2xi32, #tpu.memory_space<smem>>, %arg2: memref<3x2xi32, #tpu.memory_space<smem>>) -> (i32, i32, i32) {
    %c0_i32 = arith.constant 0 : i32
    %c0_i32_0 = arith.constant 0 : i32
    %c0_i32_1 = arith.constant 0 : i32
    return %arg0, %c0_i32, %c0_i32_0 : i32, i32, i32
  }
}

</mosaic_0001>

<bundles_post_ra>
// kernel: tpu_custom_call.1
= control target key start
LH: loop header
LB: loop body
LE: loop exit
PB: predicated region body
PF: predicated region fallthrough
CT: control target
= control target key end

     0   :  { %s1329_s0 = inlined_call_operand.vmem [shape: s32[3,2], index: 0, kind: input, shape index: {}]   ;;  %s1330_s2 = inlined_call_operand.hbm [shape: f32[3,160,128], index: 2, kind: input, shape index: {}]   ;;  %s1331_s3 = inlined_call_operand.vmem [shape: f32[2,128], index: 3, kind: input, shape index: {}]   ;;  %s1332_s4 = inlined_call_operand.vmem [shape: f32[2,1], index: 4, kind: input, shape index: {}]   ;;  %s1333_s5 = inlined_call_operand.hbm [shape: f32[4,2,128], index: 5, kind: output, shape index: {0}]   ;;  %s1334_s6 = inlined_call_operand.vmem [shape: f32[4,2,1], index: 6, kind: output, shape index: {1}]   ;;  %s1335_s1 = inlined_call_operand.vmem [shape: s32[3,2], index: 1, kind: input, shape index: {}]  }
   0x1   :  { %1341 = sst [smem:[#allocation23_spill]] %s1334_s6  ;;  %s12_s23 = sshll.u32 %s1329_s0, 4  ;;  %s13_s23 = int_to_ptr.vmem [resolvable:$true] %s12_s23 }
   0x2   :  { %s16_s26 = sshll.u32 %s1335_s1, 4  ;;  %s890_s27 = scalar_lea.vmem %s13_s23, 64  ;;  %s17_s26 = int_to_ptr.vmem [resolvable:$true] %s16_s26 }
   0x3   :  { %p891_p0 = scmp.ne.s32.totalorder %s13_s23, %s890_s27  ;;  %p895_p1 = scmp.lt.s32.totalorder %s13_s23, %s13_s23 }
   0x4   :  { %p896_p2 = scmp.lt.s32.totalorder %s890_s27, %s890_s27 }
   0x6   :  { %p897_p3 = por %p896_p2, %p895_p1 }
   0x8   :  { %p898_p4 = pnand %p897_p3, %p891_p0 }
   0xa   :  { %901 = shalt.err (!%p898_p4)  }
   0xb   :  { %s1032_s28 = smov [#allocation5]   ;;  %s902_s29 = scalar_lea.vmem %s17_s26, 64 }
   0xc   :  { %15 = dma.vmem_to_smem %s13_s23, 64, %s1032_s28, [#allocation4] }
   0xd   :  { %p903_p5 = scmp.ne.s32.totalorder %s17_s26, %s902_s29  ;;  %p907_p6 = scmp.lt.s32.totalorder %s17_s26, %s17_s26 }
   0xe   :  { %p908_p7 = scmp.lt.s32.totalorder %s902_s29, %s902_s29 }
  0x10   :  { %p909_p8 = por %p908_p7, %p907_p6 }
  0x12   :  { %p910_p9 = pnand %p909_p8, %p903_p5 }
  0x14   :  { %913 = shalt.err (!%p910_p9)  }
  0x15   :  { %s1033_s0 = smov [#allocation6]  }
  0x16   :  { %19 = dma.vmem_to_smem %s17_s26, 64, %s1033_s0, [#allocation4] }
  0x17   :  { %1006 = dma.done.wait [#allocation4], 128 }
  0x18   :  { %1007 = vsyncadd [#allocation4], 4294967168 }
  0x19   :  { %21 = sfence }
  0x1a   :  { %22 = vsyncpa [#allocation8], 0 }
  0x1b   :  { %24 = vsyncpa [#allocation8 + $0x1], 0  ;;  %s1084_s1 = smov 0   ;;  %s1086_s30 = smov 0  }
  0x1c   :  { %s1088_s7 = smov 0   ;;  %s1090_s8 = smov 0  }
  0x1d LB: > { %1342 = sst [smem:[#allocation19_spill]] %s1026_s7  ;;  %s1105_s9 = sadd.s32 4294967295, %s1030_s8   ;;  %s1030_s8 = sphi %s1090_s8, %s1351_s8   ;;  %s1026_s7 = sphi %s1088_s7, %s1353_s7   ;;  %s1022_s30 = sphi %s1086_s30, %s1355_s30   ;;  %s1018_s1 = sphi %s1084_s1, %s1354_s1  }
  0x1e   : > { %s652_s10 = sadd.s32 4294967294, %s1030_s8   ;;  %s1109_s11 = sadd.s32 1, %s1030_s8  }
  0x1f   : > { %1343 = sst [smem:[#allocation20_spill]] %s1109_s11  ;;  %s79_s12 = sadd.s32 1, %s1026_s7 }
  0x20   : > { %s76_s13 = ssub.s32 %s1030_s8, %s1109_s11  ;;  %p89_p10 = scmp.ne.s32.totalorder %s1026_s7, %s1022_s30 }
  0x21   : > { %p77_p11 = scmp.eq.s32.totalorder %s76_s13, 0  ;;  %p90_p12 = scmp.eq.s32.totalorder %s1105_s9, 1 }
  0x22   : > { %p95_p13 = scmp.ne.s32.totalorder %s1022_s30, %s1018_s1  ;;  %p96_p0 = scmp.eq.s32.totalorder %s652_s10, 1 }
  0x23   : > { %s1120_s14 = scalar_select %p77_p11, %s1026_s7, %s79_s12  }
  0x24   : > { %p1122_p1 = por %p90_p12, %p89_p10  ;;  %p1126_p2 = por %p96_p0, %p95_p13 }
  0x25   : > { %1344 = sst [smem:[#allocation21_spill]] %s1120_s14  ;;  %p654_p3 = scmp.ge.s32.totalorder %s1030_s8, 1 }
  0x26   : > { %s1346_s16 = scalar_select %p1126_p2, 1, 0 }
  0x27   : > { %p146_p4 = scmp.lt.s32.totalorder %s1030_s8, 3 }
  0x28   : > { %1347 = sst [smem:[#allocation22_spill]] %s1346_s16 }
  0x29   : > { %p147_p5 = pnand %p654_p3, %p146_p4 }
  0x2a   : > { %s1336_s17 = sand.u32 (!%p147_p5), 1, %s1022_s30   ;;  %s656_s18 = sshll.u32 (!%p147_p5), %s1105_s9, 1  ;;  %v199_v0 = vlaneseq (!%p147_p5) }
  0x2b   : > { %150 = sbr.rel (%p147_p5) target bundleno = 1611 (0x64b), region = 28  ;;  %s1136_s19 = sshll.u32 (!%p147_p5), %s1336_s17, 2 }
  0x2c   : > { %p172_p6 = scmp.lt.s32.totalorder (!%p147_p5), %s656_s18, 3  ;;  %p178_p7 = scmp.lt.s32.totalorder (!%p147_p5), %s656_s18, 2  ;;  %v1138_v1 = vand.u32 (!%p147_p5), 127, %v199_v0  ;;  %v1140_v2 = vshrl.u32 (!%p147_p5), %v199_v0, 7 }
  0x2d   : > { %s1348_s6 = sld [smem:[#allocation23_spill]] (!%p147_p5)  ;;  %s203_s28 = sadd.s32 (!%p147_p5), 1, %s656_s18 }
  0x2e   : > { %p204_p8 = scmp.lt.s32.totalorder (!%p147_p5), %s203_s28, 2  ;;  %s1034_s10 = smov (!%p147_p5), [#allocation2]  }
  0x2f   : > { %s195_s12 = sshll.u32 (!%p147_p5), %s1034_s10, 4  ;;  %s916_s14 = scalar_lea.hbm (!%p147_p5), %s1330_s2, 7680  ;;  %s1156_s12 = int_to_ptr.vmem [resolvable:$true] %s195_s12 }
  0x32   : > { %s173_s20 = scalar_select %p172_p6, %s656_s18, 3 }
  0x33   : > { %s179_s21 = scalar_select %p178_p7, %s656_s18, 2 }
  0x34   : > { %s657_s22 = sshll.u32 %s173_s20, 1  ;;  %s1357_s28 = smov (!%p204_p8, %s203_s28), 2 }
  0x35   : > { %s1145_s25 = scalar_lea.vmem %s1348_s6, %s657_s22  ;;  %s1147_s26 = sshll.u32 %s179_s21, 7 }
  0x36   : > { %s181_s27 = sld [smem:[#allocation5 + %s1147_s26]]  ;;  %s184_s29 = smul.u32 160, %s179_s21 }
  0x37   : > { %s1153_s0 = sshll.u32 %s1357_s28, 7 }
  0x38   : > { %s207_s13 = sld [smem:[#allocation5 + %s1153_s0]] }
  0x3c   : > { %p182_p9 = scmp.lt.s32.totalorder %s181_s27, 32 }
  0x3e   : > { %s1359_s27 = smov (!%p182_p9, %s181_s27), 32 }
  0x3f   : > { %s185_s20 = sadd.s32 %s184_s29, %s1359_s27 }
  0x40   : > { %s660_s22 = sshll.u32 %s185_s20, 4 }
  0x41   : > { %s187_s18 = scalar_lea.hbm %s1330_s2, %s660_s22 }
  0x42   : > { %s914_s17 = scalar_lea.hbm %s187_s18, 2048  ;;  %p917_p11 = scmp.lt.u32.totalorder %s187_s18, %s1330_s2 }
  0x43   : > { %p915_p10 = scmp.ne.s32.totalorder %s187_s18, %s914_s17  ;;  %p918_p12 = scmp.lt.u32.totalorder %s916_s14, %s914_s17 }
  0x44   : > { %p920_p0 = scmp.lt.u32.totalorder %s914_s17, %s187_s18 }
  0x45   : > { %p919_p13 = por %p918_p12, %p917_p11 }
  0x47   : > { %p921_p3 = por %p920_p0, %p919_p13 }
  0x49   : > { %p922_p4 = pnand %p921_p3, %p915_p10 }
  0x4b   : > { %925 = shalt.err (!%p922_p4)  }
  0x4c   : > { %s926_s6 = scalar_lea.vmem %s1156_s12, 2048  ;;  %s930_s27 = scalar_lea.vmem %s1156_s12, 4096 }
  0x4d   : > { %p927_p5 = scmp.ne.s32.totalorder %s1156_s12, %s926_s6  ;;  %p931_p6 = scmp.lt.s32.totalorder %s1156_s12, %s1156_s12 }
  0x4e   : > { %p932_p7 = scmp.lt.s32.totalorder %s930_s27, %s926_s6 }
  0x50   : > { %p933_p8 = por %p932_p7, %p931_p6 }
  0x52   : > { %p934_p9 = pnand %p933_p8, %p927_p5 }
  0x54   : > { %937 = shalt.err (!%p934_p9)  }
  0x55   : > { %198 = dma.hbm_to_vmem [thread:$0]  %s187_s18, 2048, %s1156_s12, [#allocation3] }
  0x56   : > { %p208_p11 = scmp.lt.s32.totalorder %s207_s13, 32  ;;  %s210_s7 = smul.u32 160, %s1357_s28 }
  0x57   : > { %s1035_s11 = smov [#allocation2 + $0x80]  }
  0x58   : > { %s223_s16 = sshll.u32 %s1035_s11, 4  ;;  %s1361_s13 = smov (!%p208_p11, %s207_s13), 32  ;;  %s224_s16 = int_to_ptr.vmem [resolvable:$true] %s223_s16 }
  0x59   : > { %s211_s17 = sadd.s32 %s210_s7, %s1361_s13 }
  0x5a   : > { %s662_s29 = sshll.u32 %s211_s17, 4 }
  0x5b   : > { %s213_s23 = scalar_lea.hbm %s1330_s2, %s662_s29 }
  0x5c   : > { %s938_s24 = scalar_lea.hbm %s213_s23, 2048  ;;  %p941_p12 = scmp.lt.u32.totalorder %s213_s23, %s1330_s2 }
  0x5d   : > { %p939_p10 = scmp.ne.s32.totalorder %s213_s23, %s938_s24  ;;  %p942_p13 = scmp.lt.u32.totalorder %s916_s14, %s938_s24 }
  0x5e   : > { %p944_p3 = scmp.lt.u32.totalorder %s938_s24, %s213_s23 }
  0x5f   : > { %p943_p0 = por %p942_p13, %p941_p12 }
  0x61   : > { %p945_p4 = por %p944_p3, %p943_p0 }
  0x63   : > { %p946_p5 = pnand %p945_p4, %p939_p10 }
  0x65   : > { %949 = shalt.err (!%p946_p5)  }
  0x66   : > { %s950_s28 = scalar_lea.vmem %s224_s16, 2048  ;;  %p955_p7 = scmp.lt.s32.totalorder %s224_s16, %s1156_s12 }
  0x67   : > { %p951_p6 = scmp.ne.s32.totalorder %s224_s16, %s950_s28  ;;  %p956_p8 = scmp.lt.s32.totalorder %s930_s27, %s950_s28 }
  0x69   : > { %p957_p9 = por %p956_p8, %p955_p7 }
  0x6b   : > { %p958_p11 = pnand %p957_p9, %p951_p6 }
  0x6d   : > { %961 = shalt.err (!%p958_p11)  }
  0x6e   : > { %226 = dma.hbm_to_vmem [thread:$0]  %s213_s23, 2048, %s224_s16, [#allocation3 + $0x1] }
  0x6f   : > { %s1190_s13 = scalar_lea.vmem [#allocation7], %s1136_s19 }
  0x70   : > { %1008 = dma.done.wait [#allocation3], 2048 }
  0x71   : > { %1009 = vsyncadd [#allocation3], 4294965248  ;;  %v1036_v3 = vmov 0.0|0.0   ;;  %vm1037_vm0 = vmmov 0   ;;  %v1038_v4 = vmov 0.0   ;;  %v1039_v5 = vmov 0  }
  0x72   : > { %779 = vmatprep.subr.bf16.mxu0 %v1036_v3  ;;  %741 = vmatprep.mubr.msk.f32.mxu0 %vm1037_vm0, %v1038_v4  ;;  %v240_v6 = vld [vmem:[#allocation2] sm:$0xff]  ;;  %v241_v7 = vld [vmem:[#allocation2 + $0x8] sm:$0xff]  ;;  %v242_v9 = vld [vmem:[#allocation2 + $0x10] sm:$0xff]  ;;  %s231_s7 = sadd.s32 1, %s1147_s26  ;;  %s230_s11 = sld [smem:[#allocation5 + %s1147_s26]]  ;;  %vm347_vm4 = vcmask 1041408  }
  0x73   : > { %876 = vset.pattern.permute.xlu0 %v1039_v5  ;;  %v780_v8 = vpack.c.bf16 %v241_v7, %v240_v6  ;;  %v243_v10 = vld [vmem:[#allocation2 + $0x18] sm:$0xff]  ;;  %v257_v11 = vld [vmem:[%s1332_s4] sm:$0x3]  ;;  %v245_v14 = vld [vmem:[#allocation2 + $0x28] sm:$0xff]  ;;  %s232_s16 = sld [smem:[#allocation5 + %s231_s7]]  ;;  %vm369_vm5 = vcmp.eq.s32.totalorder %v1140_v2, 0 }
  0x74   : > { %260 = vperm.xlu0 %876, %v257_v11   ;;  %v783_v12 = vpack.c.bf16 %v243_v10, %v242_v9  ;;  %v244_v13 = vld [vmem:[#allocation2 + $0x20] sm:$0xff]  ;;  %v246_v16 = vld [vmem:[#allocation2 + $0x30] sm:$0xff]  ;;  %v247_v17 = vld [vmem:[#allocation2 + $0x38] sm:$0xff]  ;;  %s361_s24 = sld [smem:[#allocation6 + %s1147_s26]]  ;;  %vm379_vm7 = vcmask 1024  }
  0x75   : > { %781 = vmatpush3.bf16.xpose.msra.mxu0 %v780_v8  ;;  %v786_v15 = vpack.c.bf16 %v245_v14, %v244_v13  ;;  %v789_v18 = vpack.c.bf16 %v247_v17, %v246_v16  ;;  %v248_v19 = vld [vmem:[#allocation2 + $0x40] sm:$0xff]  ;;  %v249_v20 = vld [vmem:[#allocation2 + $0x48] sm:$0xff]  ;;  %v250_v22 = vld [vmem:[#allocation2 + $0x50] sm:$0xff]  ;;  %s365_s21 = sld [smem:[#allocation6 + %s231_s7]] }
  0x76   : > { %782 = vmatprep.subr.bf16.mxu0 %v1036_v3  ;;  %v792_v21 = vpack.c.bf16 %v249_v20, %v248_v19  ;;  %v251_v23 = vld [vmem:[#allocation2 + $0x58] sm:$0xff]  ;;  %v252_v25 = vld [vmem:[#allocation2 + $0x60] sm:$0xff]  ;;  %v253_v26 = vld [vmem:[#allocation2 + $0x68] sm:$0xff] }
  0x77   : > { %v795_v24 = vpack.c.bf16 %v251_v23, %v250_v22  ;;  %v798_v27 = vpack.c.bf16 %v253_v26, %v252_v25  ;;  %v254_v28 = vld [vmem:[#allocation2 + $0x70] sm:$0xff]  ;;  %v255_v29 = vld [vmem:[#allocation2 + $0x78] sm:$0xff]  ;;  %v256_v31 = vld [vmem:[%s1331_s3] sm:$0x3] }
  0x78   : > { %v801_v30 = vpack.c.bf16 %v255_v29, %v254_v28  ;;  %p233_p10 = scmp.lt.s32.totalorder %s230_s11, 32 }
  0x79   : > { %s236_s17 = ssub.s32 %s232_s16, %s230_s11 }
  0x7a   : > { %s237_s29 = sadd.s32 1, %s236_s17 }
  0x7b   : > { %p238_p12 = scmp.lt.s32.totalorder %s237_s29, 128 }
  0x7c   : > { %s234_s20 = scalar_select %p233_p10, %s230_s11, 32 }
  0x7d   : > { %784 = vmatpush3.bf16.xpose.msra.mxu0 %v783_v12  ;;  %s1363_s29 = smov (!%p238_p12, %s237_s29), 128 }
  0x7e   : > { %785 = vmatprep.subr.bf16.mxu0 %v1036_v3  ;;  %s1213_s22 = ssub.s32 %s230_s11, %s234_s20 }
  0x7f   : > { %s335_s23 = sadd.s32 %s1363_s29, %s1213_s22  ;;  %v333_v32 = vstv %s1213_s22  ;;  %s362_s10 = sadd.s32 %s361_s24, %s1213_s22 }
  0x80   : > { %v336_v33 = vstv %s335_s23  ;;  %vm334_vm1 = vcmp.ge.s32.totalorder %v1138_v1, %v333_v32  ;;  %s366_s6 = sadd.s32 %s365_s21, %s1213_s22  ;;  %p363_p13 = scmp.lt.s32.totalorder %s362_s10, 127 }
  0x81   : > { %vm337_vm2 = vcmp.lt.s32.totalorder %v1138_v1, %v336_v33  ;;  %p367_p0 = scmp.lt.s32.totalorder %s366_s6, 127 }
  0x82   : > { %vm338_vm3 = vmand %vm334_vm1, %vm337_vm2  ;;  %s1365_s10 = smov (!%p363_p13, %s362_s10), 127 }
  0x83   : > { %v663_v34 = vsel %vm338_vm3, 1.0, %v1038_v4  ;;  %s1367_s6 = smov (!%p367_p0, %s366_s6), 127  ;;  %v370_v51 = vstv %s1365_s10 }
  0x84   : > { %v343_v35 = vadd.f32 1e-30, %v663_v34  ;;  %v371_v52 = vstv %s1367_s6 }
  0x85   : > { %787 = vmatpush3.bf16.xpose.msra.mxu0 %v786_v15  ;;  %v372_v55 = vsel %vm369_vm5, %v370_v51, %v371_v52 }
  0x86   : > { %788 = vmatprep.subr.bf16.mxu0 %v1036_v3  ;;  %877 = vlog2.f32 %v343_v35  ;;  %vm373_vm6 = vcmp.eq.s32.totalorder %v1138_v1, %v372_v55 }
  0x8d   : > { %790 = vmatpush3.bf16.xpose.msra.mxu0 %v789_v18 }
  0x8e   : > { %791 = vmatprep.subr.bf16.mxu0 %v1036_v3 }
  0x90   : > { %v878_v36 = vpop.eup %877 }
  0x91   : > { %v345_v38 = vmul.f32 0.6931472, %v878_v36 }
  0x95   : > { %793 = vmatpush3.bf16.xpose.msra.mxu0 %v792_v21 }
  0x96   : > { %794 = vmatprep.subr.bf16.mxu0 %v1036_v3 }
  0x9d   : > { %796 = vmatpush3.bf16.xpose.msra.mxu0 %v795_v24 }
  0x9e   : > { %797 = vmatprep.subr.bf16.mxu0 %v1036_v3 }
  0xa5   : > { %799 = vmatpush3.bf16.xpose.msra.mxu0 %v798_v27 }
  0xa6   : > { %800 = vmatprep.subr.bf16.mxu0 %v1036_v3 }
  0xad   : > { %802 = vmatpush3.bf16.xpose.msra.mxu0 %v801_v30 }
  0xb4   : > { %742 = vmatmul.mubr.f32.vlgmr.msra.gmra.mrb[0].mxu0 %v256_v31 }
  0xf3   : > { %v261_v37 = vpop.permute.xlu0 %260 }
 0x187   : > { %v329_v39 = vpop.f32.mrb[0].mxu0 }
 0x188   : > { %v330_v40 = vadd.f32 %v329_v39, %v261_v37  ;;  %v743_v41 = vpop.f32.mrb[1].mxu0 }
 0x18a   : > { %v339_v42 = vsel %vm338_vm3, %v330_v40, -1e+18 }
 0x18b   : > { %340 = vst [vmem:[%s1190_s13] sm:$0x3] %v339_v42  ;;  %v346_v43 = vadd.f32 %v345_v38, %v339_v42 }
 0x18d   : > { %v348_v44 = vsel %vm347_vm4, %v346_v43, -inf }
 0x18e   : > { %349 = vmax.xlane.f32.xlu0 %v348_v44 }
 0x21b   : > { %v350_v45 = vpop.xlane.xlu0 %349 }
 0x21c   : > { %v351_v46 = vsub.f32 %v346_v43, %v350_v45 }
 0x21e   : > { %v352_v47 = vmul.f32 1.442695, %v351_v46 }
 0x220   : > { %879 = vpow2.f32 %v352_v47 }
 0x22a   : > { %v880_v48 = vpop.eup %879 }
 0x22b   : > { %v354_v49 = vsel %vm347_vm4, %v880_v48, 0.0 }
 0x22c   : > { %355 = vadd.xlane.f32.xlu1 %v354_v49 }
 0x2b9   : > { %v356_v50 = vpop.xlane.xlu1 %355 }
 0x2ba   : > { %881 = vlog2.f32 %v356_v50 }
 0x2c4   : > { %v882_v53 = vpop.eup %881 }
 0x2c5   : > { %v358_v54 = vmul.f32 0.6931472, %v882_v53 }
 0x2c7   : > { %v359_v56 = vadd.f32 %v358_v54, %v350_v45 }
 0x2c9   : > { %v360_v57 = vsub.f32 %v346_v43, %v359_v56 }
 0x2cb   : > { %v374_v58 = vsel %vm373_vm6, %v360_v57, 0.0 }
 0x2cc   : > { %v375_v59 = vsel %vm347_vm4, %v374_v58, 0.0 }
 0x2cd   : > { %376 = vadd.xlane.f32.xlu1 %v375_v59 }
 0x35a   : > { %v377_v60 = vpop.xlane.xlu1 %376 }
 0x35b   : > { %v378_v61 = vsub.f32 0.0, %v377_v60 }
 0x35d   : > { %380 = vst.msk [vmem:[%s1145_s25] sm:$0x3] %vm379_vm7, %v378_v61 }
 0x35e   : > { %1010 = dma.done.wait [#allocation3 + $0x1], 2048 }
 0x35f   : > { %1011 = vsyncadd [#allocation3 + $0x1], 4294965248  ;;  %803 = vmatprep.subr.bf16.mxu1 %v1036_v3  ;;  %776 = vmatprep.mubr.msk.f32.mxu1 %vm1037_vm0, %v1038_v4  ;;  %v393_v62 = vld [vmem:[#allocation2 + $0x80] sm:$0xff]  ;;  %v394_v63 = vld [vmem:[#allocation2 + $0x88] sm:$0xff]  ;;  %s384_s19 = sadd.s32 1, %s1153_s0  ;;  %s383_s12 = sld [smem:[#allocation5 + %s1153_s0]] }
 0x360   : > { %883 = vset.pattern.permute.xlu0 %v1039_v5  ;;  %v804_v0 = vpack.c.bf16 %v394_v63, %v393_v62  ;;  %v395_v6 = vld [vmem:[#allocation2 + $0x90] sm:$0xff]  ;;  %v396_v7 = vld [vmem:[#allocation2 + $0x98] sm:$0xff]  ;;  %v410_v8 = vld [vmem:[%s1332_s4] sm:$0x3]  ;;  %s385_s27 = sld [smem:[#allocation5 + %s384_s19]]  ;;  %s552_s21 = sshll.u32 %s1190_s13, 4  ;;  %s1282_s21 = int_to_ptr.vmem [resolvable:$true] %s552_s21 }
 0x361   : > { %413 = vperm.xlu0 %883, %v410_v8   ;;  %v807_v9 = vpack.c.bf16 %v396_v7, %v395_v6  ;;  %v397_v10 = vld [vmem:[#allocation2 + $0xa0] sm:$0xff]  ;;  %v398_v11 = vld [vmem:[#allocation2 + $0xa8] sm:$0xff]  ;;  %v399_v12 = vld [vmem:[#allocation2 + $0xb0] sm:$0xff]  ;;  %s514_s20 = sld [smem:[#allocation6 + %s1153_s0]]  ;;  %s674_s0 = sshll.u32 %s1105_s9, 6 }
 0x362   : > { %805 = vmatpush3.bf16.xpose.msra.mxu1 %v804_v0  ;;  %v810_v5 = vpack.c.bf16 %v398_v11, %v397_v10  ;;  %v400_v13 = vld [vmem:[#allocation2 + $0xb8] sm:$0xff]  ;;  %v401_v15 = vld [vmem:[#allocation2 + $0xc0] sm:$0xff]  ;;  %v402_v16 = vld [vmem:[#allocation2 + $0xc8] sm:$0xff]  ;;  %s518_s22 = sld [smem:[#allocation6 + %s384_s19]]  ;;  %s1280_s26 = scalar_lea.hbm %s1333_s5, %s674_s0 }
 0x363   : > { %806 = vmatprep.subr.bf16.mxu1 %v1036_v3  ;;  %v813_v14 = vpack.c.bf16 %v400_v13, %v399_v12  ;;  %v816_v17 = vpack.c.bf16 %v402_v16, %v401_v15  ;;  %v403_v18 = vld [vmem:[#allocation2 + $0xd0] sm:$0xff]  ;;  %v404_v19 = vld [vmem:[#allocation2 + $0xd8] sm:$0xff]  ;;  %v405_v21 = vld [vmem:[#allocation2 + $0xe0] sm:$0xff]  ;;  %s1349_s18 = sand.u32 1, %s1022_s30   ;;  %s962_s14 = scalar_lea.vmem %s1282_s21, 64 }
 0x364   : > { %v819_v20 = vpack.c.bf16 %v404_v19, %v403_v18  ;;  %v406_v22 = vld [vmem:[#allocation2 + $0xe8] sm:$0xff]  ;;  %v407_v24 = vld [vmem:[#allocation2 + $0xf0] sm:$0xff]  ;;  %v408_v25 = vld [vmem:[#allocation2 + $0xf8] sm:$0xff]  ;;  %s1286_s28 = scalar_lea.sflag [#allocation8], %s1349_s18  ;;  %p963_p7 = scmp.ne.s32.totalorder %s1282_s21, %s962_s14 }
 0x365   : > { %v822_v23 = vpack.c.bf16 %v406_v22, %v405_v21  ;;  %v825_v26 = vpack.c.bf16 %v408_v25, %v407_v24  ;;  %v409_v27 = vld [vmem:[%s1331_s3] sm:$0x3]  ;;  %p386_p3 = scmp.lt.s32.totalorder %s383_s12, 32  ;;  %s1040_s9 = smov [#allocation7]  }
 0x366   : > { %s389_s7 = ssub.s32 %s385_s27, %s383_s12  ;;  %p964_p8 = pnand %p963_p7, %p1122_p1 }
 0x367   : > { %s390_s11 = sadd.s32 1, %s389_s7 }
 0x368   : > { %p391_p4 = scmp.lt.s32.totalorder %s390_s11, 128  ;;  %p965_p9 = pneg %p964_p8 }
 0x369   : > { %s387_s16 = scalar_select %p386_p3, %s383_s12, 32 }
 0x36a   : > { %808 = vmatpush3.bf16.xpose.msra.mxu1 %v807_v9  ;;  %s1369_s11 = smov (!%p391_p4, %s390_s11), 128 }
 0x36b   : > { %809 = vmatprep.subr.bf16.mxu1 %v1036_v3  ;;  %s1256_s17 = ssub.s32 %s383_s12, %s387_s16 }
 0x36c   : > { %s488_s29 = sadd.s32 %s1369_s11, %s1256_s17  ;;  %s515_s23 = sadd.s32 %s514_s20, %s1256_s17 }
 0x36d   : > { %v489_v28 = vstv %s488_s29  ;;  %s519_s24 = sadd.s32 %s518_s22, %s1256_s17  ;;  %p516_p5 = scmp.lt.s32.totalorder %s515_s23, 127 }
 0x36e   : > { %vm490_vm9 = vcmp.lt.s32.totalorder %v1138_v1, %v489_v28  ;;  %p520_p6 = scmp.lt.s32.totalorder %s519_s24, 127 }
 0x36f   : > { %s1371_s23 = smov (!%p516_p5, %s515_s23), 127 }
 0x370   : > { %s1373_s24 = smov (!%p520_p6, %s519_s24), 127  ;;  %v522_v45 = vstv %s1371_s23 }
 0x371   : > { %v523_v46 = vstv %s1373_s24 }
 0x372   : > { %811 = vmatpush3.bf16.xpose.msra.mxu1 %v810_v5  ;;  %v524_v49 = vsel %vm369_vm5, %v522_v45, %v523_v46 }
 0x373   : > { %812 = vmatprep.subr.bf16.mxu1 %v1036_v3  ;;  %vm525_vm11 = vcmp.eq.s32.totalorder %v1138_v1, %v524_v49 }
 0x37a   : > { %814 = vmatpush3.bf16.xpose.msra.mxu1 %v813_v14 }
 0x37b   : > { %815 = vmatprep.subr.bf16.mxu1 %v1036_v3 }
 0x382   : > { %817 = vmatpush3.bf16.xpose.msra.mxu1 %v816_v17 }
 0x383   : > { %818 = vmatprep.subr.bf16.mxu1 %v1036_v3 }
 0x38a   : > { %820 = vmatpush3.bf16.xpose.msra.mxu1 %v819_v20 }
 0x38b   : > { %821 = vmatprep.subr.bf16.mxu1 %v1036_v3 }
 0x392   : > { %823 = vmatpush3.bf16.xpose.msra.mxu1 %v822_v23 }
 0x393   : > { %824 = vmatprep.subr.bf16.mxu1 %v1036_v3  ;;  %v486_v3 = vstv %s1256_s17 }
 0x394   : > { %vm487_vm8 = vcmp.ge.s32.totalorder %v1138_v1, %v486_v3 }
 0x395   : > { %vm491_vm10 = vmand %vm487_vm8, %vm490_vm9 }
 0x396   : > { %v665_v29 = vsel %vm491_vm10, 1.0, %v1038_v4 }
 0x397   : > { %v497_v30 = vadd.f32 1e-30, %v665_v29 }
 0x399   : > { %884 = vlog2.f32 %v497_v30 }
 0x39a   : > { %826 = vmatpush3.bf16.xpose.msra.mxu1 %v825_v26 }
 0x3a1   : > { %777 = vmatmul.mubr.f32.vlgmr.msra.gmra.mrb[0].mxu1 %v409_v27 }
 0x3a3   : > { %v885_v31 = vpop.eup %884 }
 0x3a4   : > { %v499_v34 = vmul.f32 0.6931472, %v885_v31 }
 0x3e0   : > { %v414_v32 = vpop.permute.xlu0 %413 }
 0x474   : > { %v482_v33 = vpop.f32.mrb[0].mxu1 }
 0x475   : > { %v483_v35 = vadd.f32 %v482_v33, %v414_v32  ;;  %v778_v36 = vpop.f32.mrb[1].mxu1 }
 0x477   : > { %v492_v37 = vsel %vm491_vm10, %v483_v35, -1e+18 }
 0x478   : > { %664 = vst [vmem:[%s1190_s13 + $0x2] sm:$0x3] %v492_v37  ;;  %v500_v38 = vadd.f32 %v499_v34, %v492_v37  ;;  %s966_s13 = sshll.u32 %s1040_s9, 4  ;;  %s967_s13 = int_to_ptr.vmem [resolvable:$false] %s966_s13 }
 0x479   : > { %s968_s19 = scalar_lea.vmem %s967_s13, 128  ;;  %p969_p11 = scmp.lt.s32.totalorder %s1282_s21, %s967_s13 }
 0x47a   : > { %v501_v39 = vsel %vm347_vm4, %v500_v38, -inf  ;;  %p970_p10 = scmp.lt.s32.totalorder %s968_s19, %s962_s14 }
 0x47b   : > { %502 = vmax.xlane.f32.xlu0 %v501_v39 }
 0x47c   : > { %p971_p12 = por %p970_p10, %p969_p11 }
 0x47e   : > { %p972_p13 = pnand %p971_p12, %p965_p9 }
 0x508   : > { %v503_v40 = vpop.xlane.xlu0 %502 }
 0x509   : > { %v504_v4 = vsub.f32 %v500_v38, %v503_v40 }
 0x50b   : > { %v505_v41 = vmul.f32 1.442695, %v504_v4 }
 0x50d   : > { %886 = vpow2.f32 %v505_v41 }
 0x517   : > { %v887_v42 = vpop.eup %886 }
 0x518   : > { %v507_v43 = vsel %vm347_vm4, %v887_v42, 0.0 }
 0x519   : > { %508 = vadd.xlane.f32.xlu1 %v507_v43 }
 0x5a6   : > { %v509_v44 = vpop.xlane.xlu1 %508 }
 0x5a7   : > { %888 = vlog2.f32 %v509_v44 }
 0x5b1   : > { %v889_v47 = vpop.eup %888 }
 0x5b2   : > { %v511_v48 = vmul.f32 0.6931472, %v889_v47 }
 0x5b4   : > { %v512_v50 = vadd.f32 %v511_v48, %v503_v40 }
 0x5b6   : > { %v513_v51 = vsub.f32 %v500_v38, %v512_v50 }
 0x5b8   : > { %v526_v52 = vsel %vm525_vm11, %v513_v51, 0.0 }
 0x5b9   : > { %v527_v53 = vsel %vm347_vm4, %v526_v52, 0.0 }
 0x5ba   : > { %528 = vadd.xlane.f32.xlu1 %v527_v53 }
 0x5bb   : > { %975 = shalt.err (!%p972_p13)
}
 0x5bc   : > { %s976_s12 = scalar_lea.hbm %s1280_s26, 64  ;;  %s980_s11 = scalar_lea.hbm %s1333_s5, 128 }
 0x5bd   : > { %p977_p0 = scmp.ne.s32.totalorder %s1280_s26, %s976_s12  ;;  %p981_p5 = scmp.lt.u32.totalorder %s1280_s26, %s1333_s5 }
 0x5be   : > { %p982_p6 = scmp.lt.u32.totalorder %s980_s11, %s976_s12  ;;  %p984_p8 = scmp.lt.u32.totalorder %s976_s12, %s1280_s26 }
 0x5bf   : > { %p978_p3 = pnand %p977_p0, %p1122_p1 }
 0x5c0   : > { %p983_p7 = por %p982_p6, %p981_p5 }
 0x5c1   : > { %p979_p4 = pneg %p978_p3 }
 0x5c2   : > { %p985_p9 = por %p984_p8, %p983_p7 }
 0x5c4   : > { %p986_p11 = pnand %p985_p9, %p979_p4 }
 0x5c6   : > { %989 = shalt.err (!%p986_p11)
}
 0x5c7   : > { %s1041_s29 = smov 32   ;;  %s1042_s20 = smov 2  }
 0x5c8   : > { %827 = dma.vmem_to_hbm [thread:$0]  (%p1122_p1), %s1282_s21, 64, %s1280_s26, %s1286_s28, %s1041_s29, %s1041_s29, %s1042_s20  }
 0x647   : > { %v529_v1 = vpop.xlane.xlu1 %528 }
 0x648   : > { %v530_v2 = vsub.f32 0.0, %v529_v1 }
 0x64a   : > { %666 = vst.msk [vmem:[%s1145_s25 + $0x2] sm:$0x3] %vm379_vm7, %v530_v2 }
 0x64b PF: > { %p833_p10 = scmp.ge.s32.totalorder %s1030_s8, 2  ;;  %s571_s23 = sand.u32 1, %s1018_s1  }
 0x64c   : > { %s572_s24 = scalar_lea.sflag [#allocation8], %s571_s23 }
 0x64d   : > { %p830_p12 = pnand %p833_p10, %p1126_p2 }
 0x64f   : > { %1013 = dma.done.wait (!%p830_p12), %s572_s24, 64  }
 0x650   : > { %1015 = vsyncadd (!%p830_p12), %s572_s24, 4294967232  ;;  %s1351_s8 = sld [smem:[#allocation20_spill]]  ;;  %s1352_s0 = sld [smem:[#allocation19_spill]] }
 0x651   : > { %s1353_s7 = sld [smem:[#allocation21_spill]]  ;;  %s1354_s1 = smov %s1022_s30 }
 0x656   : > { %p27_p1 = scmp.ge.s32.totalorder %s1351_s8, 4   ;;  %s1355_s30 = smov %s1352_s0 }
 0x658   :  { %29 = sbr.rel (!%p27_p1) target bundleno = 29 (0x1d), region = 87 }
 0x65f   :  { %585 = vsyncpa [#allocation8], 1 }
 0x660   :  { %587 = vsyncpa [#allocation8 + $0x1], 1 }
 0x661   :  { %588 = vsyncmov [#allocation3] }
 0x664   :  { %s589_s15 = vpop.sfrf %588 }
 0x665   :  { %p672_p2 = scmp.ne.s32.totalorder %s589_s15, 0 }
 0x667   :  { %593 = shalt.err (%p672_p2)  }
 0x668   :  { %595 = vsyncmov [#allocation3 + $0x1] }
 0x66b   :  { %s596_s25 = vpop.sfrf %595 }
 0x66c   :  { %p673_p13 = scmp.ne.s32.totalorder %s596_s25, 0 }
 0x66e   :  { %600 = shalt.err (%p673_p13)  }

</bundles_post_ra>
